<compile_context>
chip_gen: v5e
topology: v5e:2x2
jax: 0.10.0
libtpu: 0.0.40
codegen_flags: <defaults>
</compile_context>

<pallas_src>
import jax
import jax.numpy as jnp
from jax.experimental import pallas as pl
from jax.experimental.pallas import tpu as pltpu


def _make_kernel(nc, tb):
    inv_nc = 1.0 / float(nc)

    def kernel(x_ref, w_ref, b_ref, o_ref):
        # x_ref : (tb*nc, c, hw)  bf16   one batch-tile of crops (spatial on lanes)
        # w_ref : (c, Kp)         f32    linear weight, class dim zero-padded to Kp
        # b_ref : (1, Kp)         f32    bias, padded classes = -1e30
        # o_ref : (tb, Kp)        f32    lane-dense output block
        xf = x_ref[...].astype(jnp.float32)                 # f32 compute (v5e-safe)
        pooled = jnp.mean(xf, axis=-1)                      # (tb*nc, c)  global avg pool
        logits = jnp.dot(
            pooled, w_ref[...], preferred_element_type=jnp.float32
        ) + b_ref[...]                                      # (tb*nc, Kp)

        # softmax over the (padded) class dim; padded cols have logit -1e30 -> prob 0
        m = jnp.max(logits, axis=-1, keepdims=True)
        e = jnp.exp(logits - m)
        probs = e * pl.reciprocal(jnp.sum(e, axis=-1, keepdims=True), approx=False)

        # mean over the nc crops via a small block-averaging matmul:
        # avg[b, r] = 1/nc if r in [b*nc, (b+1)*nc) else 0   (no relayout reshape)
        r = tb * nc
        rows = jax.lax.broadcasted_iota(jnp.int32, (tb, r), 0)
        cols = jax.lax.broadcasted_iota(jnp.int32, (tb, r), 1)
        in_group = (cols >= rows * nc) & (cols < rows * nc + nc)
        avg = jnp.where(in_group, inv_nc, 0.0).astype(jnp.float32)   # (tb, tb*nc)
        o_ref[...] = jnp.dot(avg, probs, preferred_element_type=jnp.float32)

    return kernel


def base_model_forward(x, w, b, *, vmem_x_budget_bytes=4 * 1024 * 1024):
    """x: (bs, nc, c, h, w) float; w: (c, K); b: (K,) -> (bs, K) float32."""
    bs, nc, c, h, wd = x.shape
    K = w.shape[1]
    hw = h * wd
    Kp = ((K + 127) // 128) * 128            # lane-dense (multiple of 128) class dim

    # bf16 transport of the big activation tensor; in-kernel math stays f32.
    x_flat = x.astype(jnp.bfloat16).reshape(bs * nc, c, hw)

    # Pad class dim: zero weight columns + very-negative bias => padded classes get
    # zero probability and do not perturb the softmax of the real classes.
    w_p = jnp.pad(w.astype(jnp.float32), ((0, 0), (0, Kp - K)))
    b_p = jnp.pad(b.astype(jnp.float32), (0, Kp - K), constant_values=-1e30)
    b_p = b_p.reshape(1, Kp)

    # Batch tile: whole batch per step when it fits the VMEM budget (the common /
    # test case -> grid=(1,)); otherwise a multiple-of-8 batch tile so the output
    # block stays sublane-aligned.  On v7x, >=2 grid steps lets the two TensorCores
    # split the "parallel" batch axis.
    bytes_per_batch = nc * c * hw * 2        # bf16
    tb = bs
    if bs * bytes_per_batch > vmem_x_budget_bytes and bs % 8 == 0:
        tb = 8
        while bs % (tb * 2) == 0 and (tb * 2) * bytes_per_batch <= vmem_x_budget_bytes:
            tb *= 2
    grid = (bs // tb,)

    cost = pl.CostEstimate(
        flops=int(bs * nc * c * hw + 2 * bs * nc * c * Kp + 4 * bs * nc * Kp),
        transcendentals=int(bs * nc * Kp),
        bytes_accessed=int(x_flat.size * 2 + w_p.size * 4 + b_p.size * 4 + bs * Kp * 4),
    )

    out = pl.pallas_call(
        _make_kernel(nc, tb),
        out_shape=jax.ShapeDtypeStruct((bs, Kp), jnp.float32),
        grid_spec=pltpu.PrefetchScalarGridSpec(
            num_scalar_prefetch=0,
            grid=grid,
            in_specs=[
                pl.BlockSpec((tb * nc, c, hw), lambda i: (i, 0, 0)),
                pl.BlockSpec((c, Kp), lambda i: (0, 0)),
                pl.BlockSpec((1, Kp), lambda i: (0, 0)),
            ],
            out_specs=pl.BlockSpec((tb, Kp), lambda i: (i, 0)),
        ),
        compiler_params=pltpu.CompilerParams(
            dimension_semantics=("parallel",),
        ),
        cost_estimate=cost,
    )(x_flat, w_p, b_p)

    return out[:, :K]


def _reference(x, w, b):
    bs, nc, c, h, wd = x.shape
    xf = x.reshape(bs * nc, c, h * wd)
    pooled = jnp.mean(xf, axis=-1)                       # (bs*nc, c)
    logits = pooled @ w + b                              # (bs*nc, K)
    probs = jax.nn.softmax(logits, axis=1)
    return probs.reshape(bs, nc, -1).mean(axis=1)


if __name__ == "__main__":
    bs, nc, c, h, wd = 2, 4, 4, 16, 16
    num_classes = 32

    key = jax.random.PRNGKey(0)
    kx, kw, kb = jax.random.split(key, 3)
    x = jax.random.normal(kx, (bs, nc, c, h, wd), dtype=jnp.float32)
    w = jax.random.normal(kw, (c, num_classes), dtype=jnp.float32) * 0.1
    b = jax.random.normal(kb, (num_classes,), dtype=jnp.float32) * 0.01

    out = base_model_forward(x, w, b)
    jax.block_until_ready(out)

    ref = _reference(x, w, b)
    assert out.shape == (bs, num_classes)
    # bf16 transport of x -> slightly loosened tolerance vs. pure-f32 reference
    assert jnp.allclose(out, ref, atol=1e-3, rtol=1e-3)

    print("KERNEL_OK")
</pallas_src>

<mosaic_0001>
module attributes {stable_mosaic.version = 11 : i64} {
  func.func @kernel(%arg0: i32, %arg1: memref<8x4x256xbf16, #tpu.memory_space<vmem>>, %arg2: memref<4x128xf32, #tpu.memory_space<vmem>>, %arg3: memref<1x128xf32, #tpu.memory_space<vmem>>, %arg4: memref<2x128xf32, #tpu.memory_space<vmem>>) attributes {dimension_semantics = [#tpu.dimension_semantics<parallel>], iteration_bounds = array<i64: 1>, scalar_prefetch = 0 : i64, scratch_operands = 0 : i64, tpu.core_type = #tpu.core_type<tc>, window_params = [{transform_indices = @transform_0, window_bounds = array<i64: 8, 4, 256>}, {pipeline_mode = #tpu.pipeline_mode<synchronous>, transform_indices = @transform_1, window_bounds = array<i64: 4, 128>}, {pipeline_mode = #tpu.pipeline_mode<synchronous>, transform_indices = @transform_2, window_bounds = array<i64: 1, 128>}, {transform_indices = @transform_3, window_bounds = array<i64: 2, 128>}]} {
    %c0 = arith.constant 0 : index
    %c0_0 = arith.constant 0 : index
    %c0_1 = arith.constant 0 : index
    %0 = vector.load %arg1[%c0, %c0_0, %c0_1] : memref<8x4x256xbf16, #tpu.memory_space<vmem>>, vector<8x4x256xbf16>
    %1 = arith.extf %0 : vector<8x4x256xbf16> to vector<8x4x256xf32>
    %cst = arith.constant dense<0.000000e+00> : vector<8x4xf32>
    %2 = vector.multi_reduction <add>, %1, %cst [2] : vector<8x4x256xf32> to vector<8x4xf32>
    %cst_2 = arith.constant 2.560000e+02 : f32
    %3 = vector.broadcast %cst_2 : f32 to vector<8x4xf32>
    %4 = arith.divf %2, %3 : vector<8x4xf32>
    %c0_3 = arith.constant 0 : index
    %c0_4 = arith.constant 0 : index
    %5 = vector.load %arg2[%c0_3, %c0_4] : memref<4x128xf32, #tpu.memory_space<vmem>>, vector<4x128xf32>
    %cst_5 = arith.constant dense<0.000000e+00> : vector<8x128xf32>
    %6 = tpu.matmul %4, %5, %cst_5 {dimension_numbers = #tpu.dot_dimension_numbers<[1], [0], [0], [1], [0, 0, 1, 1], [], []>} : vector<8x4xf32>, vector<4x128xf32>, vector<8x128xf32> -> vector<8x128xf32>
    %c0_6 = arith.constant 0 : index
    %c0_7 = arith.constant 0 : index
    %7 = vector.load %arg3[%c0_6, %c0_7] : memref<1x128xf32, #tpu.memory_space<vmem>>, vector<1x128xf32>
    %8 = vector.broadcast %7 : vector<1x128xf32> to vector<8x128xf32>
    %9 = arith.addf %6, %8 : vector<8x128xf32>
    %cst_8 = arith.constant dense<0xFF800000> : vector<8xf32>
    %10 = vector.multi_reduction <maximumf>, %9, %cst_8 [1] : vector<8x128xf32> to vector<8xf32>
    %11 = vector.shape_cast %10 : vector<8xf32> to vector<8x1xf32>
    %12 = vector.broadcast %11 : vector<8x1xf32> to vector<8x128xf32>
    %13 = arith.subf %9, %12 : vector<8x128xf32>
    %14 = math.exp %13 : vector<8x128xf32>
    %cst_9 = arith.constant dense<0.000000e+00> : vector<8xf32>
    %15 = vector.multi_reduction <add>, %14, %cst_9 [1] : vector<8x128xf32> to vector<8xf32>
    %16 = vector.shape_cast %15 : vector<8xf32> to vector<8x1xf32>
    %17 = tpu.reciprocal %16 : vector<8x1xf32> -> vector<8x1xf32>
    %18 = vector.broadcast %17 : vector<8x1xf32> to vector<8x128xf32>
    %19 = arith.mulf %14, %18 : vector<8x128xf32>
    %20 = tpu.iota {dimensions = array<i32: 0>} : vector<2x8xi32>
    %21 = tpu.iota {dimensions = array<i32: 1>} : vector<2x8xi32>
    %c4_i32 = arith.constant 4 : i32
    %22 = vector.broadcast %c4_i32 : i32 to vector<2x8xi32>
    %23 = arith.muli %20, %22 : vector<2x8xi32>
    %24 = arith.cmpi sge, %21, %23 : vector<2x8xi32>
    %c4_i32_10 = arith.constant 4 : i32
    %25 = vector.broadcast %c4_i32_10 : i32 to vector<2x8xi32>
    %26 = arith.muli %20, %25 : vector<2x8xi32>
    %c4_i32_11 = arith.constant 4 : i32
    %27 = vector.broadcast %c4_i32_11 : i32 to vector<2x8xi32>
    %28 = arith.addi %26, %27 : vector<2x8xi32>
    %29 = arith.cmpi slt, %21, %28 : vector<2x8xi32>
    %30 = arith.andi %24, %29 : vector<2x8xi1>
    %cst_12 = arith.constant 2.500000e-01 : f32
    %cst_13 = arith.constant 0.000000e+00 : f32
    %31 = vector.broadcast %cst_12 : f32 to vector<2x8xf32>
    %32 = vector.broadcast %cst_13 : f32 to vector<2x8xf32>
    %33 = arith.select %30, %31, %32 : vector<2x8xi1>, vector<2x8xf32>
    %cst_14 = arith.constant dense<0.000000e+00> : vector<2x128xf32>
    %34 = tpu.matmul %33, %19, %cst_14 {dimension_numbers = #tpu.dot_dimension_numbers<[1], [0], [0], [1], [0, 0, 1, 1], [], []>} : vector<2x8xf32>, vector<8x128xf32>, vector<2x128xf32> -> vector<2x128xf32>
    %c0_15 = arith.constant 0 : index
    %c0_16 = arith.constant 0 : index
    %35 = vector.load %arg4[%c0_15, %c0_16] : memref<2x128xf32, #tpu.memory_space<vmem>>, vector<2x128xf32>
    tpu.vector_store %arg4[%c0_15, %c0_16], %34 {strides = array<i32>} : memref<2x128xf32, #tpu.memory_space<vmem>>, vector<2x128xf32>,
    return
  }
  func.func @transform_0(%arg0: i32) -> (i32, i32, i32) {
    %c0_i32 = arith.constant 0 : i32
    %c0_i32_0 = arith.constant 0 : i32
    %c0_i32_1 = arith.constant 0 : i32
    return %arg0, %c0_i32, %c0_i32_0 : i32, i32, i32
  }
  func.func @transform_1(%arg0: i32) -> (i32, i32) {
    %c0_i32 = arith.constant 0 : i32
    %c0_i32_0 = arith.constant 0 : i32
    %c0_i32_1 = arith.constant 0 : i32
    return %c0_i32, %c0_i32_0 : i32, i32
  }
  func.func @transform_2(%arg0: i32) -> (i32, i32) {
    %c0_i32 = arith.constant 0 : i32
    %c0_i32_0 = arith.constant 0 : i32
    %c0_i32_1 = arith.constant 0 : i32
    return %c0_i32, %c0_i32_0 : i32, i32
  }
  func.func @transform_3(%arg0: i32) -> (i32, i32) {
    %c0_i32 = arith.constant 0 : i32
    %c0_i32_0 = arith.constant 0 : i32
    return %arg0, %c0_i32 : i32, i32
  }
}

</mosaic_0001>

<bundles_post_ra>
// kernel: tpu_custom_call.1
= control target key start
LH: loop header
LB: loop body
LE: loop exit
PB: predicated region body
PF: predicated region fallthrough
CT: control target
= control target key end

     0   :  { %8 = vsyncpa [#allocation3], 0  ;;  %s486_s0 = inlined_call_operand.hbm [shape: bf16[8,4,256], index: 0, kind: input, shape index: {}]   ;;  %s487_s1 = inlined_call_operand.hbm [shape: f32[4,128], index: 1, kind: input, shape index: {}]   ;;  %s488_s2 = inlined_call_operand.vmem [shape: f32[1,128], index: 2, kind: input, shape index: {}]   ;;  %s489_s3 = inlined_call_operand.hbm [shape: f32[2,128], index: 3, kind: output, shape index: {}]  }
   0x1   :  { %9 = vsyncpa [#allocation6], 0 }
   0x2   :  { %10 = vsyncpa [#allocation4], 0  ;;  %s15_s14 = sshll.u32 %s486_s0, 4  ;;  %s418_s15 = smov [#allocation2]   ;;  %s16_s14 = int_to_ptr.hbm [resolvable:$true] %s15_s14 }
   0x3   :  { %s17_s16 = sshll.u32 %s418_s15, 4  ;;  %s29_s19 = sshll.u32 %s487_s1, 4  ;;  %s18_s16 = int_to_ptr.vmem [resolvable:$true] %s17_s16  ;;  %s30_s19 = int_to_ptr.hbm [resolvable:$true] %s29_s19 }
   0x4   :  { %s419_s20 = smov 64   ;;  %s420_s21 = smov 4  }
   0x5   :  { %23 = dma.hbm_to_vmem [thread:$0]  %s16_s14, 512, %s18_s16, [#allocation3], %s419_s20, %s419_s20, %s420_s21  }
   0x6   :  { %s421_s22 = smov [#allocation5]  }
   0x7   :  { %s31_s23 = sshll.u32 %s421_s22, 4  ;;  %s32_s23 = int_to_ptr.vmem [resolvable:$true] %s31_s23 }
   0x8   :  { %34 = dma.hbm_to_vmem [thread:$0]  %s30_s19, 64, %s32_s23, [#allocation6]  }
   0x9   :  { %412 = dma.done.wait [#allocation3], 512  }
   0xa   :  { %413 = vsyncadd [#allocation3], 4294966784 }
   0xb   :  { %414 = dma.done.wait [#allocation6], 64  }
   0xc   :  { %415 = vsyncadd [#allocation6], 4294967232  ;;  %v308_v0 = vld [vmem:[#allocation2] sm:$0xff]   ;;  %v323_v1 = vld [vmem:[#allocation2 + $0x8] sm:$0xff]   ;;  %vm112_vm0 = vcmask 1043456   ;;  %v422_v52 = vmov 256.0   ;;  %v181_v61 = vlaneseq }
   0xd   :  { %v309_v2 = vunpack.c.l.bf16 %v308_v0  ;;  %v313_v3 = vunpack.c.l.bf16 %v323_v1  ;;  %v310_v4 = vunpack.c.h.bf16 %v308_v0  ;;  %v314_v5 = vunpack.c.h.bf16 %v323_v1  ;;  %v324_v6 = vld [vmem:[#allocation2 + $0x10] sm:$0xff]   ;;  %v325_v7 = vld [vmem:[#allocation2 + $0x18] sm:$0xff]   ;;  %v168_v55 = vld [vmem:[#allocation5] sm:$0xf]  ;;  %s293_s27 = sshll.u32 %s489_s3, 4  ;;  %s294_s27 = int_to_ptr.hbm [resolvable:$true] %s293_s27 }
   0xe   :  { %v317_v8 = vunpack.c.l.bf16 %v324_v6  ;;  %v321_v9 = vunpack.c.l.bf16 %v325_v7  ;;  %v318_v14 = vunpack.c.h.bf16 %v324_v6  ;;  %v322_v20 = vunpack.c.h.bf16 %v325_v7  ;;  %304 = vmatpush.msk.msra.mxu0 %vm112_vm0, %v168_v55 }
   0xf   :  { %69 = vst [vmem:[#allocation1] ss:$2 sm:$0xff] %v309_v2  ;;  %334 = vrcp.f32 %v422_v52  ;;  %v468_v63 = vand.u32 127, %v181_v61  ;;  %vm191_vm2 = vcmask 1041409   ;;  %vm193_vm3 = vcmask 1042434  }
  0x10   :  { %77 = vst [vmem:[#allocation1 + $0x20] ss:$2 sm:$0xff] %v313_v3  ;;  %vm195_vm4 = vcmask 1043459   ;;  %vm197_vm5 = vcmask 1044484   ;;  %vm199_vm6 = vcmask 1045509   ;;  %vm201_vm7 = vcmask 1046534  }
  0x11   :  { %73 = vst [vmem:[#allocation1 + $0x10] ss:$2 sm:$0xff] %v310_v4  ;;  %vm203_vm8 = vcmask 1047559   ;;  %vm205_vm9 = vcmask 31744  }
  0x12   :  { %81 = vst [vmem:[#allocation1 + $0x30] ss:$2 sm:$0xff] %v314_v5 }
  0x15   :  { %v335_v53 = vpop.eup %334 }
  0x16   :  { %v70_v10 = vld.sshfl [vmem:[#allocation1] sm:$0xff pattern:$0x75316420]  ;;  %v71_v11 = vld.sshfl [vmem:[#allocation1 + $0x8] sm:$0xff pattern:$0x75316420]  ;;  %vm158_vm1 = vweird.f32 %v335_v53 }
  0x17   :  { %v113_v12 = vsel %vm112_vm0, %v70_v10, 0.0  ;;  %v114_v13 = vsel %vm112_vm0, %v71_v11, 0.0  ;;  %84 = vst [vmem:[#allocation1] ss:$2 sm:$0xff] %v317_v8  ;;  %v154_v54 = vmul.f32 256.0, %v335_v53 }
  0x18   :  { %v115_v15 = vadd.f32 %v114_v13, %v113_v12  ;;  %v78_v16 = vld.sshfl [vmem:[#allocation1 + $0x20] sm:$0xff pattern:$0x75316420]  ;;  %v79_v17 = vld.sshfl [vmem:[#allocation1 + $0x28] sm:$0xff pattern:$0x75316420] }
  0x19   :  { %v123_v18 = vsel %vm112_vm0, %v78_v16, 0.0  ;;  %v124_v19 = vsel %vm112_vm0, %v79_v17, 0.0  ;;  %90 = vst [vmem:[#allocation1 + $0x20] ss:$2 sm:$0xff] %v321_v9  ;;  %v155_v56 = vsub.f32 1.0, %v154_v54 }
  0x1a   :  { %116 = vadd.xlane.f32.xlu0 %v115_v15  ;;  %v125_v21 = vadd.f32 %v124_v19, %v123_v18  ;;  %v74_v22 = vld.sshfl [vmem:[#allocation1 + $0x10] sm:$0xff pattern:$0x75316420]  ;;  %v75_v23 = vld.sshfl [vmem:[#allocation1 + $0x18] sm:$0xff pattern:$0x75316420] }
  0x1b   :  { %87 = vst [vmem:[#allocation1 + $0x10] ss:$2 sm:$0xff] %v318_v14  ;;  %v118_v24 = vsel %vm112_vm0, %v74_v22, 0.0  ;;  %v119_v25 = vsel %vm112_vm0, %v75_v23, 0.0  ;;  %v156_v57 = vmul.f32 %v335_v53, %v155_v56 }
  0x1c   :  { %126 = vadd.xlane.f32.xlu1 %v125_v21  ;;  %v82_v26 = vld.sshfl [vmem:[#allocation1 + $0x30] sm:$0xff pattern:$0x75316420]  ;;  %v83_v27 = vld.sshfl [vmem:[#allocation1 + $0x38] sm:$0xff pattern:$0x75316420]  ;;  %v120_v30 = vadd.f32 %v119_v25, %v118_v24 }
  0x1d   :  { %93 = vst [vmem:[#allocation1 + $0x30] ss:$2 sm:$0xff] %v322_v20  ;;  %v128_v28 = vsel %vm112_vm0, %v82_v26, 0.0  ;;  %v129_v29 = vsel %vm112_vm0, %v83_v27, 0.0  ;;  %v157_v58 = vadd.f32 %v335_v53, %v156_v57 }
  0x1e   :  { %v85_v31 = vld.sshfl [vmem:[#allocation1] sm:$0xff pattern:$0x75316420]  ;;  %v86_v32 = vld.sshfl [vmem:[#allocation1 + $0x8] sm:$0xff pattern:$0x75316420]  ;;  %v130_v36 = vadd.f32 %v129_v29, %v128_v28 }
  0x1f   :  { %v133_v33 = vsel %vm112_vm0, %v85_v31, 0.0  ;;  %v134_v34 = vsel %vm112_vm0, %v86_v32, 0.0  ;;  %v159_v62 = vsel %vm158_vm1, %v335_v53, %v157_v58  ;;  %v333_v29 = vld [vmem:[%s488_s2] ss:$0 sm:$0xff]  ;;  %vm261_vm1 = vcmask 64512   ;;  %s424_s2 = smov [#allocation7]  }
  0x20   :  { %v135_v35 = vadd.f32 %v134_v34, %v133_v33  ;;  %v91_v37 = vld.sshfl [vmem:[#allocation1 + $0x20] sm:$0xff pattern:$0x75316420]  ;;  %v92_v38 = vld.sshfl [vmem:[#allocation1 + $0x28] sm:$0xff pattern:$0x75316420] }
  0x21   :  { %v143_v43 = vsel %vm112_vm0, %v91_v37, 0.0  ;;  %v144_v44 = vsel %vm112_vm0, %v92_v38, 0.0  ;;  %s291_s24 = sshll.u32 %s424_s2, 4  ;;  %s292_s24 = int_to_ptr.vmem [resolvable:$true] %s291_s24 }
  0x22   :  { %121 = vadd.xlane.f32.xlu0 %v120_v30  ;;  %136 = vadd.xlane.f32.xlu2 %v135_v35  ;;  %v88_v39 = vld.sshfl [vmem:[#allocation1 + $0x10] sm:$0xff pattern:$0x75316420]  ;;  %v89_v40 = vld.sshfl [vmem:[#allocation1 + $0x18] sm:$0xff pattern:$0x75316420]  ;;  %v145_v50 = vadd.f32 %v144_v44, %v143_v43 }
  0x23   :  { %v138_v41 = vsel %vm112_vm0, %v88_v39, 0.0  ;;  %v139_v42 = vsel %vm112_vm0, %v89_v40, 0.0 }
  0x24   :  { %131 = vadd.xlane.f32.xlu1 %v130_v36  ;;  %v94_v45 = vld.sshfl [vmem:[#allocation1 + $0x30] sm:$0xff pattern:$0x75316420]  ;;  %v95_v46 = vld.sshfl [vmem:[#allocation1 + $0x38] sm:$0xff pattern:$0x75316420]  ;;  %v140_v49 = vadd.f32 %v139_v42, %v138_v41 }
  0x25   :  { %v148_v47 = vsel %vm112_vm0, %v94_v45, 0.0  ;;  %v149_v48 = vsel %vm112_vm0, %v95_v46, 0.0  ;;  %v254_v36 = vshrl.u32 %v181_v61, 7 }
  0x26   :  { %v150_v51 = vadd.f32 %v149_v48, %v148_v47 }
  0x27   :  { %v255_v38 = vmul.u32 4, %v254_v36 }
  0x29   :  { %v257_v40 = vadd.s32 4, %v255_v38  ;;  %vm256_vm10 = vcmp.ge.s32.totalorder %v468_v63, %v255_v38 }
  0x2a   :  { %141 = vadd.xlane.f32.xlu2 %v140_v49  ;;  %146 = vadd.xlane.f32.xlu0 %v145_v50 }
  0x2b   :  { %vm258_vm11 = vcmp.lt.s32.totalorder %v468_v63, %v257_v40 }
  0x2c   :  { %151 = vadd.xlane.f32.xlu1 %v150_v51  ;;  %vm259_vm14 = vmand %vm256_vm10, %vm258_vm11  ;;  %v423_v51 = vmov 0.0  }
  0x2d   :  { %v260_v52 = vsel %vm259_vm14, 0.25, %v423_v51 }
  0x8d   :  { %v117_v59 = vpop.xlane.xlu0 %116 }
  0x8e   :  { %v160_v0 = vmul.f32 %v159_v62, %v117_v59 }
  0x8f   :  { %v127_v60 = vpop.xlane.xlu1 %126 }
  0x90   :  { %v162_v1 = vmul.f32 %v159_v62, %v127_v60  ;;  %v183_v6 = vperm.slane %v160_v0, %v468_v63 }
  0x92   :  { %v185_v9 = vperm.slane %v162_v1, %v468_v63 }
  0x95   :  { %v122_v2 = vpop.xlane.xlu0 %121  ;;  %v137_v3 = vpop.xlane.xlu2 %136 }
  0x96   :  { %v161_v4 = vmul.f32 %v159_v62, %v122_v2  ;;  %v164_v12 = vmul.f32 %v159_v62, %v137_v3 }
  0x97   :  { %v132_v5 = vpop.xlane.xlu1 %131 }
  0x98   :  { %v184_v7 = vperm.slane %v161_v4, %v468_v63  ;;  %v163_v8 = vmul.f32 %v159_v62, %v132_v5  ;;  %v187_v19 = vperm.slane %v164_v12, %v468_v63 }
  0x9a   :  { %v192_v10 = vsel %vm191_vm2, %v184_v7, %v183_v6  ;;  %v186_v11 = vperm.slane %v163_v8, %v468_v63 }
  0x9b   :  { %v194_v13 = vsel %vm193_vm3, %v185_v9, %v192_v10 }
  0x9c   :  { %v196_v16 = vsel %vm195_vm4, %v186_v11, %v194_v13 }
  0x9d   :  { %v142_v14 = vpop.xlane.xlu2 %141  ;;  %v147_v15 = vpop.xlane.xlu0 %146  ;;  %v198_v24 = vsel %vm197_vm5, %v187_v19, %v196_v16 }
  0x9e   :  { %v165_v17 = vmul.f32 %v159_v62, %v142_v14  ;;  %v166_v18 = vmul.f32 %v159_v62, %v147_v15 }
  0x9f   :  { %v152_v20 = vpop.xlane.xlu1 %151 }
  0xa0   :  { %v188_v21 = vperm.slane %v165_v17, %v468_v63  ;;  %v189_v22 = vperm.slane %v166_v18, %v468_v63  ;;  %v167_v23 = vmul.f32 %v159_v62, %v152_v20 }
  0xa2   :  { %v190_v25 = vperm.slane %v167_v23, %v468_v63  ;;  %v200_v26 = vsel %vm199_vm6, %v188_v21, %v198_v24 }
  0xa3   :  { %v202_v27 = vsel %vm201_vm7, %v189_v22, %v200_v26 }
  0xa4   :  { %v204_v28 = vsel %vm203_vm8, %v190_v25, %v202_v27 }
  0xa5   :  { %305 = vmatmul.msk.f32.vlgmr.msra.gmra.mxu0 %vm205_vm9, %v204_v28 }
 0x122   :  { %v228_v30 = vpop.f32.mrf.mxu0 }
 0x123   :  { %v229_v31 = vadd.f32 %v333_v29, %v228_v30 }
 0x125   :  { %231 = vmax.xlane.f32.xlu2 %v229_v31 }
 0x198   :  { %v232_v32 = vpop.xlane.xlu2 %231 }
 0x199   :  { %v233_v33 = vsub.f32 %v229_v31, %v232_v32 }
 0x19b   :  { %v234_v34 = vmul.f32 1.442695, %v233_v33 }
 0x19d   :  { %336 = vpow2.f32 %v234_v34 }
 0x1a3   :  { %v337_v35 = vpop.eup %336 }
 0x1a4   :  { %236 = vadd.xlane.f32.xlu0 %v337_v35 }
 0x217   :  { %v237_v37 = vpop.xlane.xlu0 %236 }
 0x218   :  { %338 = vrcp.f32 %v237_v37  ;;  %v249_v43 = vand.u32 2147483648, %v237_v37  ;;  %v247_v45 = vand.u32 2147483647, %v237_v37  ;;  %vm243_vm13 = vweird.f32 %v237_v37 }
 0x21a   :  { %v250_v47 = vor.u32 1.1754944e-38, %v249_v43  ;;  %vm248_vm0 = vcmp.eq.f32.partialorder %v247_v45, 8.507059e+37 }
 0x21e   :  { %v339_v39 = vpop.eup %338 }
 0x21f   :  { %v239_v41 = vmul.f32 %v339_v39, %v237_v37  ;;  %vm244_vm12 = vweird.f32 %v339_v39 }
 0x220   :  { %vm245_vm15 = vmor %vm243_vm13, %vm244_vm12 }
 0x221   :  { %v240_v42 = vsub.f32 1.0, %v239_v41 }
 0x223   :  { %v241_v44 = vmul.f32 %v339_v39, %v240_v42 }
 0x225   :  { %v242_v46 = vadd.f32 %v339_v39, %v241_v44 }
 0x227   :  { %v246_v48 = vsel %vm245_vm15, %v339_v39, %v242_v46 }
 0x228   :  { %v251_v49 = vsel %vm248_vm0, %v250_v47, %v246_v48 }
 0x229   :  { %v252_v50 = vmul.f32 %v337_v35, %v251_v49 }
 0x22b   :  { %280 = vmatpush.msra.mxu1 %v252_v50 }
 0x22c   :  { %306 = vmatmul.msk.f32.vlgmr.msra.gmra.mxu1 %vm261_vm1, %v260_v52 }
 0x2a9   :  { %v282_v53 = vpop.f32.mrf.mxu1 }
 0x2aa   :  { %285 = vst [vmem:[#allocation7] sm:$0x3] %v282_v53 }
 0x2ab   :  { %296 = dma.vmem_to_hbm [thread:$0]  %s292_s24, 32, %s294_s27, [#allocation4]  }
 0x2ac   :  { %416 = dma.done.wait [#allocation4], 32  }
 0x2ad   :  { %417 = vsyncadd [#allocation4], 4294967264 }
 0x2ae   :  { %301 = vsyncpa [#allocation3], 1 }
 0x2af   :  { %302 = vsyncpa [#allocation6], 1 }
 0x2b0   :  { %303 = vsyncpa [#allocation4], 1 }

</bundles_post_ra>
